<compile_context>
chip_gen: v7x
topology: tpu7x:2x2x1
jax: 0.10.0
libtpu: 0.0.40
codegen_flags: <defaults>
</compile_context>

<pallas_src>
import functools

import jax
import jax.numpy as jnp
import numpy as np
from jax import lax
from jax.experimental import pallas as pl
from jax.experimental.pallas import tpu as pltpu

# encoder_config entries: [in_ch, out_ch, kernel, stride, padding]
ENCODER_CONFIG = [[4, 16, 3, 1, 1], [16, 32, 4, 2, 1], [32, 32, 3, 1, 1]]
EMBEDDING_DIM = 8
BN_EPS = 1e-5  # PyTorch BatchNorm1d default


def _fused_encoder_kernel(xcol_ref, w0_ref, w1_ref, w2_ref, wl_ref, small_ref,
                          o_ref, se_ref, so_ref, s2_ref, *, eps):
    """Whole encoder + lxm_embed in one kernel.

    xcol_ref : (2B, Th, K0*C0) im2col'd layer-0 input; rows [0:B] = even
               outputs, [B:2B] = odd outputs (parity folded into batch axis)
    w0_ref   : (K0*C0, C1)     layer-0 weight, taps stacked along K
    w1_ref   : (4, C1, C2)     layer-1 taps, (C_in, C_out) per tap
    w2_ref   : (3, C2, C2)     layer-2 taps
    wl_ref   : (C2, E)         lxm_embed weight (already transposed)
    small_ref: (6, Cw)         [gamma0; beta0; gamma1; beta1; bias2; bias_l]
    o_ref    : (B*Th, E)       output rows, channels-last (wrapper reshapes)
    se/so/s2 : VMEM scratch    zero-haloed staging of intermediate layers
    """
    f32 = jnp.float32
    B = se_ref.shape[0]
    Th = se_ref.shape[1] - 1            # time after the stride-2 layer
    C1 = w0_ref.shape[1]
    C2 = w1_ref.shape[2]
    E = wl_ref.shape[1]
    M = B * Th                          # rows fed to every MXU matmul

    def dot(a, b):
        return jnp.dot(a, b, preferred_element_type=f32)

    def flat(v):                        # (N, T, C) -> (N*T, C)
        return v.reshape(v.shape[0] * v.shape[1], v.shape[2])

    sm = small_ref[...]
    gamma0, beta0 = sm[0:1, 0:C1], sm[1:2, 0:C1]
    gamma1, beta1 = sm[2:3, 0:C2], sm[3:4, 0:C2]
    bias2, bias_l = sm[4:5, 0:C2], sm[5:6, 0:E]

    # ---- Layer 0: Conv1d(C0->C1, k=3, s=1, p=1) + BatchNorm ----------------
    # One matmul over the im2col'd slab; rows [0:M] are the even-time outputs,
    # rows [M:2M] the odd-time outputs (per-batch order preserved).
    # LeakyReLU(1.0) == identity -> dropped.  Conv bias dropped: it cancels
    # exactly under training-mode BN.
    xcol = flat(xcol_ref[...].astype(f32))               # (2M, K0*C0)
    h0 = dot(xcol, w0_ref[...])                          # (2M, C1)

    n0 = 2.0 * M                        # BN stats over ALL (batch, time) rows
    mean0 = jnp.sum(h0, axis=0, keepdims=True) / n0
    var0 = jnp.sum(jnp.square(h0 - mean0), axis=0, keepdims=True) / n0
    scale0 = gamma0 * lax.rsqrt(var0 + eps)
    h0 = h0 * scale0 + (beta0 - scale0 * mean0)

    # Stage layer-0 output with zeroed halo rows only (the halo rows are the
    # conv zero-padding; interior is fully overwritten below -> no full init).
    zrow1 = jnp.zeros((B, 1, C1), f32)
    se_ref[:, 0:Th, :] = h0[0:M, :].reshape(B, Th, C1)        # even t=0,2,...
    se_ref[:, Th:Th + 1, :] = zrow1
    so_ref[:, 0:1, :] = zrow1
    so_ref[:, 1:Th + 1, :] = h0[M:2 * M, :].reshape(B, Th, C1)  # odd t=1,3,...

    # ---- Layer 1: Conv1d(C1->C2, k=4, s=2, p=1) + BatchNorm ----------------
    # Output u consumes padded layer-0 positions 2u..2u+3, which live at
    # so[u], se[u], so[u+1], se[u+1] -> four contiguous slices, no gathers.
    h1 = (dot(flat(so_ref[:, 0:Th, :]), w1_ref[0])
          + dot(flat(se_ref[:, 0:Th, :]), w1_ref[1])
          + dot(flat(so_ref[:, 1:Th + 1, :]), w1_ref[2])
          + dot(flat(se_ref[:, 1:Th + 1, :]), w1_ref[3]))

    mean1 = jnp.mean(h1, axis=0, keepdims=True)
    var1 = jnp.mean(jnp.square(h1 - mean1), axis=0, keepdims=True)
    scale1 = gamma1 * lax.rsqrt(var1 + eps)
    h1 = h1 * scale1 + (beta1 - scale1 * mean1)

    # ---- Layer 2: Conv1d(C2->C2, k=3, s=1, p=1) + bias (no BN, last conv) --
    zrow2 = jnp.zeros((B, 1, C2), f32)
    s2_ref[:, 0:1, :] = zrow2
    s2_ref[:, 1:Th + 1, :] = h1.reshape(B, Th, C2)
    s2_ref[:, Th + 1:Th + 2, :] = zrow2
    h2 = (dot(flat(s2_ref[:, 0:Th, :]), w2_ref[0])
          + dot(flat(s2_ref[:, 1:Th + 1, :]), w2_ref[1])
          + dot(flat(s2_ref[:, 2:Th + 2, :]), w2_ref[2])
          + bias2)

    # ---- lxm_embed: Linear(C2 -> E) applied per (batch, time) row ----------
    o_ref[...] = (dot(h2, wl_ref[...]) + bias_l).astype(o_ref.dtype)


def prepare_params(params, w_lin, b_lin):
    """One-time hoist of weight transposes / small-parameter packing."""
    assert len(params) == 3, "fused kernel is specialised to 3 conv layers"
    p0, p1, p2 = params
    assert (p0["ksize"], p0["stride"], p0["pad"]) == (3, 1, 1)
    assert (p1["ksize"], p1["stride"], p1["pad"]) == (4, 2, 1)
    assert (p2["ksize"], p2["stride"], p2["pad"]) == (3, 1, 1)

    w0 = jnp.transpose(p0["w"], (2, 1, 0))        # (K0, C0, C1)
    C1 = p0["w"].shape[0]
    C2 = p2["w"].shape[0]
    E = w_lin.shape[0]
    Cw = max(C1, C2, E)

    def row(v):                                   # pad 1-D vec to Cw lanes
        return jnp.pad(v, (0, Cw - v.shape[0])).reshape(1, Cw)

    small = jnp.concatenate(
        [row(p0["gamma"]), row(p0["beta"]),
         row(p1["gamma"]), row(p1["beta"]),
         row(p2["b"]), row(b_lin)], axis=0)       # (6, Cw)

    return dict(
        w0=w0.reshape(-1, w0.shape[2]),           # (K0*C0, C1) taps stacked
        w1=jnp.transpose(p1["w"], (2, 1, 0)),     # (4, C1, C2)
        w2=jnp.transpose(p2["w"], (2, 1, 0)),     # (3, C2, C2)
        wl=jnp.transpose(w_lin),                  # (C2, E)
        small=small,
    )


def vqvae1d_encoder_forward(x_bct, prep):
    """x_bct: (B, C_in, T) as in PyTorch. Returns (B, embedding_dim, T//2)."""
    B, _, T0 = x_bct.shape
    assert T0 % 2 == 0, "fused kernel assumes an even input length"
    Th = T0 // 2
    C1 = prep["w0"].shape[1]
    C2 = prep["w1"].shape[2]
    E = prep["wl"].shape[1]
    M = B * Th

    # NCL -> NLC, pad for conv0, split padded time into even/odd rows, then
    # build the parity-split im2col slab. All cheap XLA ops on the tiny input;
    # the kernel then only touches contiguous slices (no stride-2 gathers and
    # a single MXU matmul for layer 0).
    x_btc = jnp.transpose(x_bct, (0, 2, 1)).astype(jnp.float32)
    x_pad = jnp.pad(x_btc, ((0, 0), (1, 1), (0, 0)))     # (B, T0+2, C0)
    xe = x_pad[:, 0::2, :]                               # (B, Th+1, C0)
    xo = x_pad[:, 1::2, :]                               # (B, Th+1, C0)
    xcol_e = jnp.concatenate([xe[:, :Th], xo[:, :Th], xe[:, 1:Th + 1]], axis=-1)
    xcol_o = jnp.concatenate([xo[:, :Th], xe[:, 1:Th + 1], xo[:, 1:Th + 1]],
                             axis=-1)
    xcol = jnp.concatenate([xcol_e, xcol_o], axis=0)     # (2B, Th, K0*C0)

    def full(shape):
        return pl.BlockSpec(shape, lambda i: (0,) * len(shape))

    kern = functools.partial(_fused_encoder_kernel, eps=BN_EPS)

    out_flat = pl.pallas_call(
        kern,
        out_shape=jax.ShapeDtypeStruct((M, E), jnp.float32),
        grid=(1,),
        in_specs=[full(xcol.shape), full(prep["w0"].shape),
                  full(prep["w1"].shape), full(prep["w2"].shape),
                  full(prep["wl"].shape), full(prep["small"].shape)],
        out_specs=full((M, E)),
        scratch_shapes=[
            pltpu.VMEM((B, Th + 1, C1), jnp.float32),    # even rows + halo
            pltpu.VMEM((B, Th + 1, C1), jnp.float32),    # odd rows + halo
            pltpu.VMEM((B, Th + 2, C2), jnp.float32),    # layer-2 padded input
        ],
        compiler_params=pltpu.CompilerParams(
            dimension_semantics=("arbitrary",)),
    )(xcol, prep["w0"], prep["w1"], prep["w2"], prep["wl"], prep["small"])

    # (B*Th, E) -> (B, E, Th): tiny transpose, left to XLA (no lane-dense
    # layout exists at E=8 without padding to 128 lanes, which would cost more
    # than it saves at this size).
    return jnp.transpose(out_flat.reshape(B, Th, E), (0, 2, 1))


def init_params(key, encoder_config, embedding_dim):
    """Deterministic parameter init (PyTorch-style uniform bounds)."""
    params = []
    for c in encoder_config:
        cin, cout, k, stride, pad = c
        key, k1, k2 = jax.random.split(key, 3)
        bound = 1.0 / np.sqrt(cin * k)
        w = jax.random.uniform(k1, (cout, cin, k), jnp.float32, -bound, bound)
        b = jax.random.uniform(k2, (cout,), jnp.float32, -bound, bound)
        params.append(dict(w=w, b=b,
                           gamma=jnp.ones((cout,), jnp.float32),
                           beta=jnp.zeros((cout,), jnp.float32),
                           stride=stride, pad=pad, ksize=k))
    cin_lin = encoder_config[-1][1]
    key, k1, k2 = jax.random.split(key, 3)
    bound = 1.0 / np.sqrt(cin_lin)
    w_lin = jax.random.uniform(k1, (embedding_dim, cin_lin), jnp.float32, -bound, bound)
    b_lin = jax.random.uniform(k2, (embedding_dim,), jnp.float32, -bound, bound)
    # NOTE: pre_vq_conv is created in the PyTorch __init__ but never used in
    # forward(); it is intentionally omitted.
    return params, w_lin, b_lin


def ref_forward(x_bct, params, w_lin, b_lin, eps=BN_EPS):
    """Pure-JAX reference mirroring the PyTorch forward (training-mode BN)."""
    z = x_bct
    n = len(params)
    for i, p in enumerate(params):
        z = lax.conv_general_dilated(z, p["w"],
                                     window_strides=(p["stride"],),
                                     padding=[(p["pad"], p["pad"])],
                                     dimension_numbers=("NCH", "OIH", "NCH"))
        z = z + p["b"][None, :, None]
        if i < n - 1:
            mean = jnp.mean(z, axis=(0, 2), keepdims=True)
            var = jnp.mean((z - mean) ** 2, axis=(0, 2), keepdims=True)
            z = (p["gamma"][None, :, None] * (z - mean) / jnp.sqrt(var + eps)
                 + p["beta"][None, :, None])
            z = jnp.where(z >= 0, z, 1.0 * z)   # LeakyReLU(1.0) == identity
    zt = jnp.transpose(z, (0, 2, 1))
    zt = zt @ w_lin.T + b_lin
    return jnp.transpose(zt, (0, 2, 1))


if __name__ == "__main__":
    key = jax.random.PRNGKey(0)
    key, kx, kp = jax.random.split(key, 3)
    x = jax.random.normal(kx, (2, 4, 16), jnp.float32)    # (B, C_in, T)
    params, w_lin, b_lin = init_params(kp, ENCODER_CONFIG, EMBEDDING_DIM)
    prep = prepare_params(params, w_lin, b_lin)

    fwd = jax.jit(vqvae1d_encoder_forward)
    out = jax.block_until_ready(fwd(x, prep))

    ref = ref_forward(x, params, w_lin, b_lin)
    np.testing.assert_allclose(np.asarray(out), np.asarray(ref),
                               rtol=1e-4, atol=1e-4)
    assert out.shape == (2, EMBEDDING_DIM, 8), out.shape
    print("KERNEL_OK")
</pallas_src>

<mosaic_0001>
module attributes {stable_mosaic.version = 11 : i64} {
  func.func @_fused_encoder_kernel(%arg0: i32, %arg1: memref<4x8x12xf32, #tpu.memory_space<vmem>>, %arg2: memref<12x16xf32, #tpu.memory_space<vmem>>, %arg3: memref<4x16x32xf32, #tpu.memory_space<vmem>>, %arg4: memref<3x32x32xf32, #tpu.memory_space<vmem>>, %arg5: memref<32x8xf32, #tpu.memory_space<vmem>>, %arg6: memref<6x32xf32, #tpu.memory_space<vmem>>, %arg7: memref<16x8xf32, #tpu.memory_space<vmem>>, %arg8: memref<2x9x16xf32, #tpu.memory_space<vmem>>, %arg9: memref<2x9x16xf32, #tpu.memory_space<vmem>>, %arg10: memref<2x10x32xf32, #tpu.memory_space<vmem>>) attributes {dimension_semantics = [#tpu.dimension_semantics<arbitrary>], iteration_bounds = array<i64: 1>, scalar_prefetch = 0 : i64, scratch_operands = 3 : i64, tpu.core_type = #tpu.core_type<tc>, window_params = [{pipeline_mode = #tpu.pipeline_mode<synchronous>, transform_indices = @transform_0, window_bounds = array<i64: 4, 8, 12>}, {pipeline_mode = #tpu.pipeline_mode<synchronous>, transform_indices = @transform_1, window_bounds = array<i64: 12, 16>}, {pipeline_mode = #tpu.pipeline_mode<synchronous>, transform_indices = @transform_2, window_bounds = array<i64: 4, 16, 32>}, {pipeline_mode = #tpu.pipeline_mode<synchronous>, transform_indices = @transform_3, window_bounds = array<i64: 3, 32, 32>}, {pipeline_mode = #tpu.pipeline_mode<synchronous>, transform_indices = @transform_4, window_bounds = array<i64: 32, 8>}, {pipeline_mode = #tpu.pipeline_mode<synchronous>, transform_indices = @transform_5, window_bounds = array<i64: 6, 32>}, {pipeline_mode = #tpu.pipeline_mode<synchronous>, transform_indices = @transform_6, window_bounds = array<i64: 16, 8>}]} {
    %c0 = arith.constant 0 : index
    %c0_0 = arith.constant 0 : index
    %0 = vector.load %arg6[%c0, %c0_0] : memref<6x32xf32, #tpu.memory_space<vmem>>, vector<6x32xf32>
    %1 = vector.extract_strided_slice %0 {offsets = [0, 0], sizes = [1, 16], strides = [1, 1]} : vector<6x32xf32> to vector<1x16xf32>
    %2 = vector.extract_strided_slice %0 {offsets = [1, 0], sizes = [1, 16], strides = [1, 1]} : vector<6x32xf32> to vector<1x16xf32>
    %3 = vector.extract_strided_slice %0 {offsets = [2, 0], sizes = [1, 32], strides = [1, 1]} : vector<6x32xf32> to vector<1x32xf32>
    %4 = vector.extract_strided_slice %0 {offsets = [3, 0], sizes = [1, 32], strides = [1, 1]} : vector<6x32xf32> to vector<1x32xf32>
    %5 = vector.extract_strided_slice %0 {offsets = [4, 0], sizes = [1, 32], strides = [1, 1]} : vector<6x32xf32> to vector<1x32xf32>
    %6 = vector.extract_strided_slice %0 {offsets = [5, 0], sizes = [1, 8], strides = [1, 1]} : vector<6x32xf32> to vector<1x8xf32>
    %c0_1 = arith.constant 0 : index
    %c0_2 = arith.constant 0 : index
    %c0_3 = arith.constant 0 : index
    %7 = vector.load %arg1[%c0_1, %c0_2, %c0_3] : memref<4x8x12xf32, #tpu.memory_space<vmem>>, vector<4x8x12xf32>
    %8 = vector.shape_cast %7 : vector<4x8x12xf32> to vector<32x12xf32>
    %c0_4 = arith.constant 0 : index
    %c0_5 = arith.constant 0 : index
    %9 = vector.load %arg2[%c0_4, %c0_5] : memref<12x16xf32, #tpu.memory_space<vmem>>, vector<12x16xf32>
    %cst = arith.constant dense<0.000000e+00> : vector<32x16xf32>
    %10 = tpu.matmul %8, %9, %cst {dimension_numbers = #tpu.dot_dimension_numbers<[1], [0], [0], [1], [0, 0, 1, 1], [], []>} : vector<32x12xf32>, vector<12x16xf32>, vector<32x16xf32> -> vector<32x16xf32>
    %cst_6 = arith.constant dense<0.000000e+00> : vector<16xf32>
    %11 = vector.multi_reduction <add>, %10, %cst_6 [0] : vector<32x16xf32> to vector<16xf32>
    %12 = vector.shape_cast %11 : vector<16xf32> to vector<1x16xf32>
    %cst_7 = arith.constant 3.200000e+01 : f32
    %13 = vector.broadcast %cst_7 : f32 to vector<1x16xf32>
    %14 = arith.divf %12, %13 : vector<1x16xf32>
    %15 = vector.broadcast %14 : vector<1x16xf32> to vector<32x16xf32>
    %16 = arith.subf %10, %15 : vector<32x16xf32>
    %17 = arith.mulf %16, %16 : vector<32x16xf32>
    %cst_8 = arith.constant dense<0.000000e+00> : vector<16xf32>
    %18 = vector.multi_reduction <add>, %17, %cst_8 [0] : vector<32x16xf32> to vector<16xf32>
    %19 = vector.shape_cast %18 : vector<16xf32> to vector<1x16xf32>
    %cst_9 = arith.constant 3.200000e+01 : f32
    %20 = vector.broadcast %cst_9 : f32 to vector<1x16xf32>
    %21 = arith.divf %19, %20 : vector<1x16xf32>
    %cst_10 = arith.constant 9.99999974E-6 : f32
    %22 = vector.broadcast %cst_10 : f32 to vector<1x16xf32>
    %23 = arith.addf %21, %22 : vector<1x16xf32>
    %24 = math.rsqrt %23 : vector<1x16xf32>
    %25 = arith.mulf %1, %24 : vector<1x16xf32>
    %26 = vector.broadcast %25 : vector<1x16xf32> to vector<32x16xf32>
    %27 = arith.mulf %10, %26 : vector<32x16xf32>
    %28 = arith.mulf %25, %14 : vector<1x16xf32>
    %29 = arith.subf %2, %28 : vector<1x16xf32>
    %30 = vector.broadcast %29 : vector<1x16xf32> to vector<32x16xf32>
    %31 = arith.addf %27, %30 : vector<32x16xf32>
    %cst_11 = arith.constant 0.000000e+00 : f32
    %32 = vector.broadcast %cst_11 : f32 to vector<2x1x16xf32>
    %33 = vector.extract_strided_slice %31 {offsets = [0, 0], sizes = [16, 16], strides = [1, 1]} : vector<32x16xf32> to vector<16x16xf32>
    %34 = vector.shape_cast %33 : vector<16x16xf32> to vector<2x8x16xf32>
    %c0_12 = arith.constant 0 : index
    %c0_13 = arith.constant 0 : index
    %c0_14 = arith.constant 0 : index
    %35 = vector.load %arg8[%c0_12, %c0_13, %c0_14] : memref<2x9x16xf32, #tpu.memory_space<vmem>>, vector<2x8x16xf32>
    tpu.vector_store %arg8[%c0_12, %c0_13, %c0_14], %34 {strides = array<i32>} : memref<2x9x16xf32, #tpu.memory_space<vmem>>, vector<2x8x16xf32>,
    %c0_15 = arith.constant 0 : index
    %c8 = arith.constant 8 : index
    %c0_16 = arith.constant 0 : index
    %36 = vector.load %arg8[%c0_15, %c8, %c0_16] : memref<2x9x16xf32, #tpu.memory_space<vmem>>, vector<2x1x16xf32>
    tpu.vector_store %arg8[%c0_15, %c8, %c0_16], %32 {strides = array<i32>} : memref<2x9x16xf32, #tpu.memory_space<vmem>>, vector<2x1x16xf32>,
    %c0_17 = arith.constant 0 : index
    %c0_18 = arith.constant 0 : index
    %c0_19 = arith.constant 0 : index
    %37 = vector.load %arg9[%c0_17, %c0_18, %c0_19] : memref<2x9x16xf32, #tpu.memory_space<vmem>>, vector<2x1x16xf32>
    tpu.vector_store %arg9[%c0_17, %c0_18, %c0_19], %32 {strides = array<i32>} : memref<2x9x16xf32, #tpu.memory_space<vmem>>, vector<2x1x16xf32>,
    %38 = vector.extract_strided_slice %31 {offsets = [16, 0], sizes = [16, 16], strides = [1, 1]} : vector<32x16xf32> to vector<16x16xf32>
    %39 = vector.shape_cast %38 : vector<16x16xf32> to vector<2x8x16xf32>
    %c0_20 = arith.constant 0 : index
    %c1 = arith.constant 1 : index
    %c0_21 = arith.constant 0 : index
    %40 = vector.load %arg9[%c0_20, %c1, %c0_21] : memref<2x9x16xf32, #tpu.memory_space<vmem>>, vector<2x8x16xf32>
    tpu.vector_store %arg9[%c0_20, %c1, %c0_21], %39 {strides = array<i32>} : memref<2x9x16xf32, #tpu.memory_space<vmem>>, vector<2x8x16xf32>,
    %c0_22 = arith.constant 0 : index
    %c0_23 = arith.constant 0 : index
    %c0_24 = arith.constant 0 : index
    %41 = vector.load %arg9[%c0_22, %c0_23, %c0_24] : memref<2x9x16xf32, #tpu.memory_space<vmem>>, vector<2x8x16xf32>
    %42 = vector.shape_cast %41 : vector<2x8x16xf32> to vector<16x16xf32>
    %c0_25 = arith.constant 0 : index
    %c0_26 = arith.constant 0 : index
    %c0_27 = arith.constant 0 : index
    %43 = vector.load %arg3[%c0_25, %c0_26, %c0_27] : memref<4x16x32xf32, #tpu.memory_space<vmem>>, vector<1x16x32xf32>
    %44 = vector.shape_cast %43 : vector<1x16x32xf32> to vector<16x32xf32>
    %cst_28 = arith.constant dense<0.000000e+00> : vector<16x32xf32>
    %45 = tpu.matmul %42, %44, %cst_28 {dimension_numbers = #tpu.dot_dimension_numbers<[1], [0], [0], [1], [0, 0, 1, 1], [], []>} : vector<16x16xf32>, vector<16x32xf32>, vector<16x32xf32> -> vector<16x32xf32>
    %c0_29 = arith.constant 0 : index
    %c0_30 = arith.constant 0 : index
    %c0_31 = arith.constant 0 : index
    %46 = vector.load %arg8[%c0_29, %c0_30, %c0_31] : memref<2x9x16xf32, #tpu.memory_space<vmem>>, vector<2x8x16xf32>
    %47 = vector.shape_cast %46 : vector<2x8x16xf32> to vector<16x16xf32>
    %c1_32 = arith.constant 1 : index
    %c0_33 = arith.constant 0 : index
    %c0_34 = arith.constant 0 : index
    %48 = vector.load %arg3[%c1_32, %c0_33, %c0_34] : memref<4x16x32xf32, #tpu.memory_space<vmem>>, vector<1x16x32xf32>
    %49 = vector.shape_cast %48 : vector<1x16x32xf32> to vector<16x32xf32>
    %cst_35 = arith.constant dense<0.000000e+00> : vector<16x32xf32>
    %50 = tpu.matmul %47, %49, %cst_35 {dimension_numbers = #tpu.dot_dimension_numbers<[1], [0], [0], [1], [0, 0, 1, 1], [], []>} : vector<16x16xf32>, vector<16x32xf32>, vector<16x32xf32> -> vector<16x32xf32>
    %51 = arith.addf %45, %50 : vector<16x32xf32>
    %c0_36 = arith.constant 0 : index
    %c1_37 = arith.constant 1 : index
    %c0_38 = arith.constant 0 : index
    %52 = vector.load %arg9[%c0_36, %c1_37, %c0_38] : memref<2x9x16xf32, #tpu.memory_space<vmem>>, vector<2x8x16xf32>
    %53 = vector.shape_cast %52 : vector<2x8x16xf32> to vector<16x16xf32>
    %c2 = arith.constant 2 : index
    %c0_39 = arith.constant 0 : index
    %c0_40 = arith.constant 0 : index
    %54 = vector.load %arg3[%c2, %c0_39, %c0_40] : memref<4x16x32xf32, #tpu.memory_space<vmem>>, vector<1x16x32xf32>
    %55 = vector.shape_cast %54 : vector<1x16x32xf32> to vector<16x32xf32>
    %cst_41 = arith.constant dense<0.000000e+00> : vector<16x32xf32>
    %56 = tpu.matmul %53, %55, %cst_41 {dimension_numbers = #tpu.dot_dimension_numbers<[1], [0], [0], [1], [0, 0, 1, 1], [], []>} : vector<16x16xf32>, vector<16x32xf32>, vector<16x32xf32> -> vector<16x32xf32>
    %57 = arith.addf %51, %56 : vector<16x32xf32>
    %c0_42 = arith.constant 0 : index
    %c1_43 = arith.constant 1 : index
    %c0_44 = arith.constant 0 : index
    %58 = vector.load %arg8[%c0_42, %c1_43, %c0_44] : memref<2x9x16xf32, #tpu.memory_space<vmem>>, vector<2x8x16xf32>
    %59 = vector.shape_cast %58 : vector<2x8x16xf32> to vector<16x16xf32>
    %c3 = arith.constant 3 : index
    %c0_45 = arith.constant 0 : index
    %c0_46 = arith.constant 0 : index
    %60 = vector.load %arg3[%c3, %c0_45, %c0_46] : memref<4x16x32xf32, #tpu.memory_space<vmem>>, vector<1x16x32xf32>
    %61 = vector.shape_cast %60 : vector<1x16x32xf32> to vector<16x32xf32>
    %cst_47 = arith.constant dense<0.000000e+00> : vector<16x32xf32>
    %62 = tpu.matmul %59, %61, %cst_47 {dimension_numbers = #tpu.dot_dimension_numbers<[1], [0], [0], [1], [0, 0, 1, 1], [], []>} : vector<16x16xf32>, vector<16x32xf32>, vector<16x32xf32> -> vector<16x32xf32>
    %63 = arith.addf %57, %62 : vector<16x32xf32>
    %cst_48 = arith.constant dense<0.000000e+00> : vector<32xf32>
    %64 = vector.multi_reduction <add>, %63, %cst_48 [0] : vector<16x32xf32> to vector<32xf32>
    %65 = vector.shape_cast %64 : vector<32xf32> to vector<1x32xf32>
    %cst_49 = arith.constant 1.600000e+01 : f32
    %66 = vector.broadcast %cst_49 : f32 to vector<1x32xf32>
    %67 = arith.divf %65, %66 : vector<1x32xf32>
    %68 = vector.broadcast %67 : vector<1x32xf32> to vector<16x32xf32>
    %69 = arith.subf %63, %68 : vector<16x32xf32>
    %70 = arith.mulf %69, %69 : vector<16x32xf32>
    %cst_50 = arith.constant dense<0.000000e+00> : vector<32xf32>
    %71 = vector.multi_reduction <add>, %70, %cst_50 [0] : vector<16x32xf32> to vector<32xf32>
    %72 = vector.shape_cast %71 : vector<32xf32> to vector<1x32xf32>
    %cst_51 = arith.constant 1.600000e+01 : f32
    %73 = vector.broadcast %cst_51 : f32 to vector<1x32xf32>
    %74 = arith.divf %72, %73 : vector<1x32xf32>
    %cst_52 = arith.constant 9.99999974E-6 : f32
    %75 = vector.broadcast %cst_52 : f32 to vector<1x32xf32>
    %76 = arith.addf %74, %75 : vector<1x32xf32>
    %77 = math.rsqrt %76 : vector<1x32xf32>
    %78 = arith.mulf %3, %77 : vector<1x32xf32>
    %79 = vector.broadcast %78 : vector<1x32xf32> to vector<16x32xf32>
    %80 = arith.mulf %63, %79 : vector<16x32xf32>
    %81 = arith.mulf %78, %67 : vector<1x32xf32>
    %82 = arith.subf %4, %81 : vector<1x32xf32>
    %83 = vector.broadcast %82 : vector<1x32xf32> to vector<16x32xf32>
    %84 = arith.addf %80, %83 : vector<16x32xf32>
    %cst_53 = arith.constant 0.000000e+00 : f32
    %85 = vector.broadcast %cst_53 : f32 to vector<2x1x32xf32>
    %c0_54 = arith.constant 0 : index
    %c0_55 = arith.constant 0 : index
    %c0_56 = arith.constant 0 : index
    %86 = vector.load %arg10[%c0_54, %c0_55, %c0_56] : memref<2x10x32xf32, #tpu.memory_space<vmem>>, vector<2x1x32xf32>
    tpu.vector_store %arg10[%c0_54, %c0_55, %c0_56], %85 {strides = array<i32>} : memref<2x10x32xf32, #tpu.memory_space<vmem>>, vector<2x1x32xf32>,
    %87 = vector.shape_cast %84 : vector<16x32xf32> to vector<2x8x32xf32>
    %c0_57 = arith.constant 0 : index
    %c1_58 = arith.constant 1 : index
    %c0_59 = arith.constant 0 : index
    %88 = vector.load %arg10[%c0_57, %c1_58, %c0_59] : memref<2x10x32xf32, #tpu.memory_space<vmem>>, vector<2x8x32xf32>
    tpu.vector_store %arg10[%c0_57, %c1_58, %c0_59], %87 {strides = array<i32>} : memref<2x10x32xf32, #tpu.memory_space<vmem>>, vector<2x8x32xf32>,
    %c0_60 = arith.constant 0 : index
    %c9 = arith.constant 9 : index
    %c0_61 = arith.constant 0 : index
    %89 = vector.load %arg10[%c0_60, %c9, %c0_61] : memref<2x10x32xf32, #tpu.memory_space<vmem>>, vector<2x1x32xf32>
    tpu.vector_store %arg10[%c0_60, %c9, %c0_61], %85 {strides = array<i32>} : memref<2x10x32xf32, #tpu.memory_space<vmem>>, vector<2x1x32xf32>,
    %c0_62 = arith.constant 0 : index
    %c0_63 = arith.constant 0 : index
    %c0_64 = arith.constant 0 : index
    %90 = vector.load %arg10[%c0_62, %c0_63, %c0_64] : memref<2x10x32xf32, #tpu.memory_space<vmem>>, vector<2x8x32xf32>
    %91 = vector.shape_cast %90 : vector<2x8x32xf32> to vector<16x32xf32>
    %c0_65 = arith.constant 0 : index
    %c0_66 = arith.constant 0 : index
    %c0_67 = arith.constant 0 : index
    %92 = vector.load %arg4[%c0_65, %c0_66, %c0_67] : memref<3x32x32xf32, #tpu.memory_space<vmem>>, vector<1x32x32xf32>
    %93 = vector.shape_cast %92 : vector<1x32x32xf32> to vector<32x32xf32>
    %cst_68 = arith.constant dense<0.000000e+00> : vector<16x32xf32>
    %94 = tpu.matmul %91, %93, %cst_68 {dimension_numbers = #tpu.dot_dimension_numbers<[1], [0], [0], [1], [0, 0, 1, 1], [], []>} : vector<16x32xf32>, vector<32x32xf32>, vector<16x32xf32> -> vector<16x32xf32>
    %c0_69 = arith.constant 0 : index
    %c1_70 = arith.constant 1 : index
    %c0_71 = arith.constant 0 : index
    %95 = vector.load %arg10[%c0_69, %c1_70, %c0_71] : memref<2x10x32xf32, #tpu.memory_space<vmem>>, vector<2x8x32xf32>
    %96 = vector.shape_cast %95 : vector<2x8x32xf32> to vector<16x32xf32>
    %c1_72 = arith.constant 1 : index
    %c0_73 = arith.constant 0 : index
    %c0_74 = arith.constant 0 : index
    %97 = vector.load %arg4[%c1_72, %c0_73, %c0_74] : memref<3x32x32xf32, #tpu.memory_space<vmem>>, vector<1x32x32xf32>
    %98 = vector.shape_cast %97 : vector<1x32x32xf32> to vector<32x32xf32>
    %cst_75 = arith.constant dense<0.000000e+00> : vector<16x32xf32>
    %99 = tpu.matmul %96, %98, %cst_75 {dimension_numbers = #tpu.dot_dimension_numbers<[1], [0], [0], [1], [0, 0, 1, 1], [], []>} : vector<16x32xf32>, vector<32x32xf32>, vector<16x32xf32> -> vector<16x32xf32>
    %100 = arith.addf %94, %99 : vector<16x32xf32>
    %c0_76 = arith.constant 0 : index
    %c2_77 = arith.constant 2 : index
    %c0_78 = arith.constant 0 : index
    %101 = vector.load %arg10[%c0_76, %c2_77, %c0_78] : memref<2x10x32xf32, #tpu.memory_space<vmem>>, vector<2x8x32xf32>
    %102 = vector.shape_cast %101 : vector<2x8x32xf32> to vector<16x32xf32>
    %c2_79 = arith.constant 2 : index
    %c0_80 = arith.constant 0 : index
    %c0_81 = arith.constant 0 : index
    %103 = vector.load %arg4[%c2_79, %c0_80, %c0_81] : memref<3x32x32xf32, #tpu.memory_space<vmem>>, vector<1x32x32xf32>
    %104 = vector.shape_cast %103 : vector<1x32x32xf32> to vector<32x32xf32>
    %cst_82 = arith.constant dense<0.000000e+00> : vector<16x32xf32>
    %105 = tpu.matmul %102, %104, %cst_82 {dimension_numbers = #tpu.dot_dimension_numbers<[1], [0], [0], [1], [0, 0, 1, 1], [], []>} : vector<16x32xf32>, vector<32x32xf32>, vector<16x32xf32> -> vector<16x32xf32>
    %106 = arith.addf %100, %105 : vector<16x32xf32>
    %107 = vector.broadcast %5 : vector<1x32xf32> to vector<16x32xf32>
    %108 = arith.addf %106, %107 : vector<16x32xf32>
    %c0_83 = arith.constant 0 : index
    %c0_84 = arith.constant 0 : index
    %109 = vector.load %arg5[%c0_83, %c0_84] : memref<32x8xf32, #tpu.memory_space<vmem>>, vector<32x8xf32>
    %cst_85 = arith.constant dense<0.000000e+00> : vector<16x8xf32>
    %110 = tpu.matmul %108, %109, %cst_85 {dimension_numbers = #tpu.dot_dimension_numbers<[1], [0], [0], [1], [0, 0, 1, 1], [], []>} : vector<16x32xf32>, vector<32x8xf32>, vector<16x8xf32> -> vector<16x8xf32>
    %111 = vector.broadcast %6 : vector<1x8xf32> to vector<16x8xf32>
    %112 = arith.addf %110, %111 : vector<16x8xf32>
    %c0_86 = arith.constant 0 : index
    %c0_87 = arith.constant 0 : index
    %113 = vector.load %arg7[%c0_86, %c0_87] : memref<16x8xf32, #tpu.memory_space<vmem>>, vector<16x8xf32>
    tpu.vector_store %arg7[%c0_86, %c0_87], %112 {strides = array<i32>} : memref<16x8xf32, #tpu.memory_space<vmem>>, vector<16x8xf32>,
    return
  }
  func.func @transform_0(%arg0: i32) -> (i32, i32, i32) {
    %c0_i32 = arith.constant 0 : i32
    %c0_i32_0 = arith.constant 0 : i32
    %c0_i32_1 = arith.constant 0 : i32
    %c0_i32_2 = arith.constant 0 : i32
    return %c0_i32, %c0_i32_0, %c0_i32_1 : i32, i32, i32
  }
  func.func @transform_1(%arg0: i32) -> (i32, i32) {
    %c0_i32 = arith.constant 0 : i32
    %c0_i32_0 = arith.constant 0 : i32
    %c0_i32_1 = arith.constant 0 : i32
    return %c0_i32, %c0_i32_0 : i32, i32
  }
  func.func @transform_2(%arg0: i32) -> (i32, i32, i32) {
    %c0_i32 = arith.constant 0 : i32
    %c0_i32_0 = arith.constant 0 : i32
    %c0_i32_1 = arith.constant 0 : i32
    %c0_i32_2 = arith.constant 0 : i32
    return %c0_i32, %c0_i32_0, %c0_i32_1 : i32, i32, i32
  }
  func.func @transform_3(%arg0: i32) -> (i32, i32, i32) {
    %c0_i32 = arith.constant 0 : i32
    %c0_i32_0 = arith.constant 0 : i32
    %c0_i32_1 = arith.constant 0 : i32
    %c0_i32_2 = arith.constant 0 : i32
    return %c0_i32, %c0_i32_0, %c0_i32_1 : i32, i32, i32
  }
  func.func @transform_4(%arg0: i32) -> (i32, i32) {
    %c0_i32 = arith.constant 0 : i32
    %c0_i32_0 = arith.constant 0 : i32
    %c0_i32_1 = arith.constant 0 : i32
    return %c0_i32, %c0_i32_0 : i32, i32
  }
  func.func @transform_5(%arg0: i32) -> (i32, i32) {
    %c0_i32 = arith.constant 0 : i32
    %c0_i32_0 = arith.constant 0 : i32
    %c0_i32_1 = arith.constant 0 : i32
    return %c0_i32, %c0_i32_0 : i32, i32
  }
  func.func @transform_6(%arg0: i32) -> (i32, i32) {
    %c0_i32 = arith.constant 0 : i32
    %c0_i32_0 = arith.constant 0 : i32
    %c0_i32_1 = arith.constant 0 : i32
    return %c0_i32, %c0_i32_0 : i32, i32
  }
}

</mosaic_0001>

<bundles_post_ra>
// kernel: vqvae1d_encoder_forward.1
= control target key start
LH: loop header
LB: loop body
LE: loop exit
PB: predicated region body
PF: predicated region fallthrough
CT: control target
= control target key end

     0   :  { %vm43_vm0 = vcmask 1043456   ;;  %vm30_vm1 = vcmask 97280   ;;  %vm1203_vm2 = vmmov 1   ;;  %vm196_vm4 = vcmask 122880   ;;  %s1401_s1 = inlined_call_operand.vmem [shape: f32[12,16], index: 1, kind: input, shape index: {}]   ;;  %s1402_s0 = inlined_call_operand.vmem [shape: f32[4,8,12], index: 0, kind: input, shape index: {}]   ;;  %s1403_s2 = inlined_call_operand.vmem [shape: f32[4,16,32], index: 2, kind: input, shape index: {}]   ;;  %s1404_s5 = inlined_call_operand.vmem [shape: f32[6,32], index: 5, kind: input, shape index: {}]   ;;  %s1405_s3 = inlined_call_operand.vmem [shape: f32[3,32,32], index: 3, kind: input, shape index: {}]   ;;  %s1406_s4 = inlined_call_operand.vmem [shape: f32[32,8], index: 4, kind: input, shape index: {}]   ;;  %s1407_s6 = inlined_call_operand.vmem [shape: f32[16,8], index: 6, kind: output, shape index: {}]  }
   0x1   :  { %v28_v0 = vld [vmem:[%s1401_s1] sm:$0xff]  ;;  %v29_v1 = vld [vmem:[%s1401_s1 + $0x8] sm:$0xf]  ;;  %vm1134_vm3 = vmpackc.low %vm43_vm0, %vm1203_vm2  ;;  %v1204_v7 = vmov 0.0   ;;  %vm132_vm5 = vcmask 130048   ;;  %v173_v55 = vlaneseq  ;;  %vm596_vm6 = vcmask 253952  }
   0x2   :  { %v1133_v2 = vpack.c.bf16 %v29_v1, %v28_v0  ;;  %v24_v3 = vld [vmem:[%s1402_s0] sm:$0xff]  ;;  %v25_v4 = vld [vmem:[%s1402_s0 + $0x8] sm:$0xff]  ;;  %v26_v5 = vld [vmem:[%s1402_s0 + $0x10] sm:$0xff]  ;;  %199 = vst.msk [vmem:[#allocation3] sm:$0x1] %vm196_vm4, %v1204_v7  ;;  %vm550_vm7 = vcmask 261120  }
   0x3   :  { %1055 = vmatprep.mubr.msk.f32.mxu0 %vm30_vm1, %v24_v3  ;;  %v27_v6 = vld [vmem:[%s1402_s0 + $0x18] sm:$0xff]  ;;  %197 = vst.msk [vmem:[#allocation2 + $0x8] sm:$0x1] %vm196_vm4, %v1204_v7  ;;  %198 = vst.msk [vmem:[#allocation2 + $0x18] sm:$0x1] %vm196_vm4, %v1204_v7  ;;  %v975_v8 = vld [vmem:[%s1403_s2 + $0x10] sm:$0xff] }
   0x4   :  { %1135 = vmatprep.subr.msk.bf16.mxu0 %vm1134_vm3, %v1133_v2  ;;  %200 = vst.msk [vmem:[#allocation3 + $0x10] sm:$0x1] %vm196_vm4, %v1204_v7  ;;  %v976_v9 = vld [vmem:[%s1403_s2 + $0x18] sm:$0xff]  ;;  %v205_v11 = vld [vmem:[%s1403_s2] sm:$0xff]  ;;  %v206_v12 = vld [vmem:[%s1403_s2 + $0x8] sm:$0xff]  ;;  %v1285_v56 = vshrl.u32 %v173_v55, 7 }
   0x5   :  { %1138 = vmatpush3.bf16.msk.msra.mxu0 %vm1134_vm3, %v1133_v2  ;;  %v1139_v10 = vpack.c.bf16 %v976_v9, %v975_v8  ;;  %v1274_v13 = vpack.c.bf16 %v206_v12, %v205_v11  ;;  %v1290_v57 = vld [vmem:[%s1404_s5] sm:$0x3f]  ;;  %597 = vst.msk [vmem:[#allocation4] sm:$0x1] %vm596_vm6, %v1204_v7  ;;  %598 = vst.msk [vmem:[#allocation4 + $0x10] sm:$0x1] %vm596_vm6, %v1204_v7 }
   0x6   :  { %v175_v58 = vsub.s32 0, %v1285_v56  ;;  %v981_v12 = vld [vmem:[%s1403_s2 + $0x20] sm:$0xff]  ;;  %601 = vst.msk [vmem:[#allocation4 + $0x9] sm:$0x1] %vm596_vm6, %v1204_v7  ;;  %602 = vst.msk [vmem:[#allocation4 + $0x19] sm:$0x1] %vm596_vm6, %v1204_v7 }
   0x7   :  { %1140 = vmatprep.subr.bf16.mxu1 %v1139_v10  ;;  %v875_v7 = vld [vmem:[%s1406_s4 + $0x8] sm:$0xff]  ;;  %vm963_vm8 = vcmask 64512  }
   0x8   :  { %1056 = vmatmul.mubr.msk.f32.vlgmr.msra.gmra.mrb[0].mxu0 %vm30_vm1, %v25_v4  ;;  %1142 = vmatpush3.bf16.msra.mxu1 %v1139_v10  ;;  %v188_v4 = vsub.s32 1, %v1285_v56 }
   0x9   :  { %1058 = vmatprep.mubr.msk.f32.mxu0 %vm30_vm1, %v26_v5  ;;  %1144 = vmatprep.subr.bf16.mxu1 %v1274_v13 }
   0xc   :  { %1059 = vmatmul.mubr.msk.f32.gmra.mrb[2].mxu0 %vm30_vm1, %v27_v6 }
  0xdb   :  { %v1057_v14 = vpop.f32.mrb[0].mxu0 }
  0xdc   :  { %v134_v15 = vsel %vm132_vm5, %v1057_v14, 0.0  ;;  %v113_v16 = vpop.f32.mrb[1].mxu0 }
  0xdd   :  { %v133_v17 = vsel %vm132_vm5, %v113_v16, 0.0 }
  0xde   :  { %v135_v18 = vadd.f32 %v134_v15, %v133_v17 }
  0xdf   :  { %v1060_v19 = vpop.f32.mrb[2].mxu0 }
  0xe0   :  { %v123_v20 = vpop.f32.mrb[3].mxu0  ;;  %v138_v23 = vsel %vm132_vm5, %v1060_v19, 0.0 }
  0xe1   :  { %v136_v21 = vsel %vm132_vm5, %v123_v20, 0.0 }
  0xe2   :  { %v137_v22 = vadd.f32 %v136_v21, %v135_v18 }
  0xe4   :  { %v139_v24 = vadd.f32 %v138_v23, %v137_v22 }
  0xe6   :  { %v140_v25 = vrot.slane %v139_v24, 4 }
  0xe8   :  { %v141_v26 = vadd.f32 %v140_v25, %v139_v24 }
  0xea   :  { %v142_v27 = vrot.slane %v141_v26, 2 }
  0xec   :  { %v143_v28 = vadd.f32 %v142_v27, %v141_v26  ;;  %v989_v26 = vld [vmem:[%s1405_s3 + $0x20] sm:$0xff]  ;;  %v990_v27 = vld [vmem:[%s1405_s3 + $0x28] sm:$0xff] }
  0xee   :  { %v144_v29 = vrot.slane %v143_v28, 1 }
  0xf0   :  { %v145_v30 = vadd.f32 %v144_v29, %v143_v28  ;;  %v991_v28 = vld [vmem:[%s1405_s3 + $0x30] sm:$0xff]  ;;  %v1155_v29 = vpack.c.bf16 %v990_v27, %v989_v26  ;;  %v1000_v26 = vld [vmem:[%s1405_s3 + $0x58] sm:$0xff] }
  0xf2   :  { %v147_v31 = vmul.f32 0.03125, %v145_v30  ;;  %v992_v30 = vld [vmem:[%s1405_s3 + $0x38] sm:$0xff]  ;;  %1156 = vmatprep.subr.bf16.mxu0 %v1155_v29 }
  0xf3   :  { %1158 = vmatpush3.bf16.msra.mxu0 %v1155_v29 }
  0xf4   :  { %v148_v32 = vsub.f32 %v113_v16, %v147_v31  ;;  %v149_v33 = vsub.f32 %v1057_v14, %v147_v31  ;;  %v150_v34 = vsub.f32 %v123_v20, %v147_v31  ;;  %v151_v35 = vsub.f32 %v1060_v19, %v147_v31 }
  0xf6   :  { %v152_v36 = vmul.f32 %v148_v32, %v148_v32  ;;  %v153_v37 = vmul.f32 %v149_v33, %v149_v33  ;;  %v154_v38 = vmul.f32 %v150_v34, %v150_v34  ;;  %v155_v39 = vmul.f32 %v151_v35, %v151_v35  ;;  %v605_v32 = vld [vmem:[%s1405_s3] sm:$0xff]  ;;  %v606_v33 = vld [vmem:[%s1405_s3 + $0x8] sm:$0xff] }
  0xf7   :  { %v1163_v34 = vpack.c.bf16 %v606_v33, %v605_v32  ;;  %v874_v35 = vld [vmem:[%s1406_s4] sm:$0xff]  ;;  %v877_v32 = vld [vmem:[%s1406_s4 + $0x18] sm:$0xff] }
  0xf8   :  { %v156_v40 = vsel %vm132_vm5, %v152_v36, 0.0  ;;  %v157_v41 = vsel %vm132_vm5, %v153_v37, 0.0  ;;  %v159_v43 = vsel %vm132_vm5, %v154_v38, 0.0  ;;  %v161_v45 = vsel %vm132_vm5, %v155_v39, 0.0 }
  0xf9   :  { %v158_v42 = vadd.f32 %v157_v41, %v156_v40  ;;  %v1179_v36 = vpack.c.bf16 %v875_v7, %v874_v35 }
  0xfb   :  { %v160_v44 = vadd.f32 %v159_v43, %v158_v42 }
  0xfd   :  { %v162_v46 = vadd.f32 %v161_v45, %v160_v44 }
  0xff   :  { %v163_v47 = vrot.slane %v162_v46, 4 }
 0x101   :  { %v164_v48 = vadd.f32 %v163_v47, %v162_v46 }
 0x103   :  { %v165_v49 = vrot.slane %v164_v48, 2 }
 0x105   :  { %v166_v50 = vadd.f32 %v165_v49, %v164_v48 }
 0x107   :  { %v167_v51 = vrot.slane %v166_v50, 1 }
 0x109   :  { %v168_v52 = vadd.f32 %v167_v51, %v166_v50 }
 0x10b   :  { %v169_v53 = vmul.f32 0.03125, %v168_v52 }
 0x10d   :  { %v170_v54 = vadd.f32 1e-05, %v169_v53 }
 0x10f   :  { %1199 = vrsqrt.f32 %v170_v54 }
 0x119   :  { %v1200_v59 = vpop.eup %1199 }
 0x11a   :  { %v172_v60 = vmul.f32 %v1200_v59, %v1290_v57 }
 0x11c   :  { %v176_v61 = vrot.slane %v172_v60, %v175_v58  ;;  %v181_v62 = vmul.f32 %v172_v60, %v147_v31  ;;  %v1159_v31 = vpack.c.bf16 %v992_v30, %v991_v28 }
 0x11e   :  { %v177_v63 = vmul.f32 %v176_v61, %v113_v16  ;;  %v178_v0 = vmul.f32 %v1057_v14, %v176_v61  ;;  %v179_v1 = vmul.f32 %v176_v61, %v123_v20  ;;  %v180_v2 = vmul.f32 %v1060_v19, %v176_v61  ;;  %v982_v14 = vld [vmem:[%s1403_s2 + $0x28] sm:$0xff]  ;;  %v985_v19 = vld [vmem:[%s1403_s2 + $0x30] sm:$0xff]  ;;  %v986_v20 = vld [vmem:[%s1403_s2 + $0x38] sm:$0xff]  ;;  %1160 = vmatprep.subr.bf16.mxu0 %v1159_v31 }
 0x11f   :  { %v183_v3 = vrot.slane %v181_v62, 7  ;;  %v1147_v17 = vpack.c.bf16 %v982_v14, %v981_v12  ;;  %v1151_v21 = vpack.c.bf16 %v986_v20, %v985_v19  ;;  %1162 = vmatpush3.bf16.msra.mxu0 %v1159_v31  ;;  %v876_v31 = vld [vmem:[%s1406_s4 + $0x10] sm:$0xff] }
 0x120   :  { %1164 = vmatprep.subr.bf16.mxu0 %v1163_v34  ;;  %v1183_v33 = vpack.c.bf16 %v877_v32, %v876_v31 }
 0x121   :  { %v185_v5 = vsub.f32 %v1290_v57, %v183_v3 }
 0x123   :  { %v189_v6 = vrot.slane %v185_v5, %v188_v4 }
 0x125   :  { %v190_v8 = vadd.f32 %v189_v6, %v177_v63  ;;  %v191_v9 = vadd.f32 %v189_v6, %v178_v0  ;;  %v192_v10 = vadd.f32 %v189_v6, %v179_v1  ;;  %v193_v11 = vadd.f32 %v189_v6, %v180_v2 }
 0x126   :  { %v581_v2 = vsub.s32 2, %v1285_v56 }
 0x127   :  { %194 = vst.msk [vmem:[#allocation2] sm:$0xff] %vm132_vm5, %v190_v8  ;;  %195 = vst.msk [vmem:[#allocation2 + $0x10] sm:$0xff] %vm132_vm5, %v191_v9 }
 0x128   :  { %201 = vst.msk [vmem:[#allocation3 + $0x1] sm:$0xff] %vm132_vm5, %v192_v10  ;;  %202 = vst.msk [vmem:[#allocation3 + $0x11] sm:$0xff] %vm132_vm5, %v193_v11  ;;  %v592_v11 = vsub.s32 3, %v1285_v56 }
 0x12e   :  { %v207_v15 = vld [vmem:[#allocation2] sm:$0xff]  ;;  %v208_v16 = vld [vmem:[#allocation2 + $0x10] sm:$0xff] }
 0x12f   :  { %1065 = vmatprep.mubr.msk.f32.mxu1 %vm132_vm5, %v207_v15  ;;  %v203_v18 = vld [vmem:[#allocation3] sm:$0xff]  ;;  %v204_v22 = vld [vmem:[#allocation3 + $0x10] sm:$0xff] }
 0x130   :  { %1066 = vmatmul.mubr.msk.f32.vlgmr.msra.gmra.mrb[0].mxu1 %vm132_vm5, %v208_v16  ;;  %v374_v23 = vld [vmem:[#allocation3 + $0x1] sm:$0xff]  ;;  %v463_v25 = vld [vmem:[#allocation2 + $0x11] sm:$0xff] }
 0x131   :  { %1146 = vmatpush3.bf16.msra.mxu1 %v1274_v13  ;;  %1072 = vmatprep.mubr.msk.f32.mxu1 %vm132_vm5, %v203_v18  ;;  %v375_v13 = vld [vmem:[#allocation3 + $0x11] sm:$0xff]  ;;  %v462_v24 = vld [vmem:[#allocation2 + $0x1] sm:$0xff] }
 0x132   :  { %1148 = vmatprep.subr.bf16.mxu1 %v1147_v17  ;;  %v608_v18 = vld [vmem:[%s1405_s3 + $0x18] sm:$0xff] }
 0x138   :  { %1073 = vmatmul.mubr.msk.f32.vlgmr.msra.gmra.mrb[0].mxu1 %vm132_vm5, %v204_v22  ;;  %v997_v22 = vld [vmem:[%s1405_s3 + $0x40] sm:$0xff] }
 0x139   :  { %1150 = vmatpush3.bf16.msra.mxu1 %v1147_v17  ;;  %1079 = vmatprep.mubr.msk.f32.mxu1 %vm132_vm5, %v374_v23  ;;  %v607_v17 = vld [vmem:[%s1405_s3 + $0x10] sm:$0xff]  ;;  %v998_v23 = vld [vmem:[%s1405_s3 + $0x48] sm:$0xff] }
 0x13a   :  { %1152 = vmatprep.subr.bf16.mxu1 %v1151_v21 }
 0x140   :  { %1080 = vmatmul.mubr.msk.f32.vlgmr.msra.gmra.mrb[0].mxu1 %vm132_vm5, %v375_v13 }
 0x141   :  { %1154 = vmatpush3.bf16.msra.mxu1 %v1151_v21  ;;  %1086 = vmatprep.mubr.msk.f32.mxu1 %vm132_vm5, %v462_v24  ;;  %v1167_v21 = vpack.c.bf16 %v608_v18, %v607_v17  ;;  %v1171_v24 = vpack.c.bf16 %v998_v23, %v997_v22 }
 0x142   :  { %1180 = vmatprep.subr.bf16.mxu1 %v1179_v36 }
 0x148   :  { %1087 = vmatmul.mubr.msk.f32.vlgmr.msra.gmra.mrb[0].mxu1 %vm132_vm5, %v463_v25  ;;  %v999_v25 = vld [vmem:[%s1405_s3 + $0x50] sm:$0xff] }
 0x149   :  { %1182 = vmatpush3.bf16.msra.mxu1 %v1179_v36  ;;  %v1175_v27 = vpack.c.bf16 %v1000_v26, %v999_v25 }
 0x14a   :  { %1184 = vmatprep.subr.bf16.mxu1 %v1183_v33 }
 0x14d   :  { %1186 = vmatpush3.bf16.msra.mxu1 %v1183_v33 }
 0x21b   :  { %v1088_v37 = vpop.f32.mrb[0].mxu1 }
 0x21c   :  { %v552_v38 = vsel %vm550_vm7, %v1088_v37, 0.0  ;;  %v539_v39 = vpop.f32.mrb[1].mxu1 }
 0x21d   :  { %v551_v40 = vsel %vm550_vm7, %v539_v39, 0.0 }
 0x21e   :  { %v553_v41 = vadd.f32 %v552_v38, %v551_v40 }
 0x220   :  { %v554_v42 = vrot.slane %v553_v41, 4 }
 0x222   :  { %v555_v43 = vadd.f32 %v554_v42, %v553_v41 }
 0x224   :  { %v556_v44 = vrot.slane %v555_v43, 2 }
 0x226   :  { %v557_v45 = vadd.f32 %v556_v44, %v555_v43 }
 0x228   :  { %v558_v46 = vrot.slane %v557_v45, 1 }
 0x22a   :  { %v559_v47 = vadd.f32 %v558_v46, %v557_v45 }
 0x22c   :  { %v561_v48 = vmul.f32 0.0625, %v559_v47 }
 0x22e   :  { %v562_v49 = vsub.f32 %v539_v39, %v561_v48  ;;  %v563_v50 = vsub.f32 %v1088_v37, %v561_v48 }
 0x230   :  { %v564_v51 = vmul.f32 %v562_v49, %v562_v49  ;;  %v565_v52 = vmul.f32 %v563_v50, %v563_v50 }
 0x232   :  { %v566_v53 = vsel %vm550_vm7, %v564_v51, 0.0  ;;  %v567_v54 = vsel %vm550_vm7, %v565_v52, 0.0 }
 0x233   :  { %v568_v55 = vadd.f32 %v567_v54, %v566_v53 }
 0x235   :  { %v569_v58 = vrot.slane %v568_v55, 4 }
 0x237   :  { %v570_v59 = vadd.f32 %v569_v58, %v568_v55 }
 0x239   :  { %v571_v60 = vrot.slane %v570_v59, 2 }
 0x23b   :  { %v572_v61 = vadd.f32 %v571_v60, %v570_v59 }
 0x23d   :  { %v573_v62 = vrot.slane %v572_v61, 1 }
 0x23f   :  { %v574_v63 = vadd.f32 %v573_v62, %v572_v61 }
 0x241   :  { %v575_v0 = vmul.f32 0.0625, %v574_v63 }
 0x243   :  { %v576_v1 = vadd.f32 1e-05, %v575_v0 }
 0x245   :  { %1201 = vrsqrt.f32 %v576_v1 }
 0x24f   :  { %v1202_v3 = vpop.eup %1201 }
 0x250   :  { %v578_v4 = vmul.f32 %v1202_v3, %v1290_v57 }
 0x252   :  { %v582_v5 = vrot.slane %v578_v4, %v581_v2  ;;  %v585_v6 = vmul.f32 %v578_v4, %v561_v48 }
 0x254   :  { %v583_v8 = vmul.f32 %v582_v5, %v539_v39  ;;  %v584_v9 = vmul.f32 %v1088_v37, %v582_v5  ;;  %v587_v10 = vrot.slane %v585_v6, 7  ;;  %v880_v39 = vsub.s32 5, %v1285_v56 }
 0x256   :  { %v589_v12 = vsub.f32 %v1290_v57, %v587_v10  ;;  %v881_v40 = vrot.slane %v1290_v57, %v880_v39 }
 0x258   :  { %v593_v14 = vrot.slane %v589_v12, %v592_v11 }
 0x25a   :  { %v594_v15 = vadd.f32 %v593_v14, %v583_v8  ;;  %v595_v16 = vadd.f32 %v593_v14, %v584_v9 }
 0x25c   :  { %599 = vst.msk [vmem:[#allocation4 + $0x1] sm:$0xff] %vm550_vm7, %v594_v15  ;;  %600 = vst.msk [vmem:[#allocation4 + $0x11] sm:$0xff] %vm550_vm7, %v595_v16 }
 0x263   :  { %v609_v19 = vld [vmem:[#allocation4 + $0x1] sm:$0xff]  ;;  %v610_v20 = vld [vmem:[#allocation4 + $0x11] sm:$0xff] }
 0x264   :  { %1097 = vmatprep.mubr.msk.f32.mxu0 %vm550_vm7, %v609_v19  ;;  %v603_v13 = vld [vmem:[#allocation4] sm:$0xff]  ;;  %v604_v28 = vld [vmem:[#allocation4 + $0x10] sm:$0xff] }
 0x265   :  { %1098 = vmatmul.mubr.msk.f32.vlgmr.msra.gmra.mrb[4].mxu0 %vm550_vm7, %v610_v20  ;;  %v778_v29 = vld [vmem:[#allocation4 + $0x2] sm:$0xff]  ;;  %v779_v30 = vld [vmem:[#allocation4 + $0x12] sm:$0xff] }
 0x266   :  { %1166 = vmatpush3.bf16.msra.mxu0 %v1163_v34  ;;  %1108 = vmatprep.mubr.msk.f32.mxu0 %vm550_vm7, %v603_v13  ;;  %v870_v34 = vsub.s32 4, %v1285_v56 }
 0x267   :  { %1168 = vmatprep.subr.bf16.mxu0 %v1167_v21 }
 0x268   :  { %v871_v35 = vrot.slane %v1290_v57, %v870_v34 }
 0x26a   :  { %1170 = vmatpush3.bf16.msra.mxu0 %v1167_v21 }
 0x26b   :  { %1172 = vmatprep.subr.bf16.mxu0 %v1171_v24 }
 0x26d   :  { %1109 = vmatmul.mubr.msk.f32.vlgmr.msra.gmra.mrb[4].mxu0 %vm550_vm7, %v604_v28 }
 0x26e   :  { %1174 = vmatpush3.bf16.msra.mxu0 %v1171_v24  ;;  %1119 = vmatprep.mubr.msk.f32.mxu0 %vm550_vm7, %v778_v29 }
 0x26f   :  { %1176 = vmatprep.subr.bf16.mxu0 %v1175_v27 }
 0x272   :  { %1178 = vmatpush3.bf16.msra.mxu0 %v1175_v27 }
 0x275   :  { %1120 = vmatmul.mubr.msk.f32.vlgmr.msra.gmra.mrb[4].mxu0 %vm550_vm7, %v779_v30 }
 0x348   :  { %v1121_v7 = vpop.f32.mrb[4].mxu0 }
 0x349   :  { %v857_v36 = vpop.f32.mrb[5].mxu0  ;;  %v873_v38 = vadd.f32 %v1121_v7, %v871_v35 }
 0x34a   :  { %v872_v37 = vadd.f32 %v871_v35, %v857_v36 }
 0x34c   :  { %1130 = vmatprep.mubr.msk.f32.mxu1 %vm550_vm7, %v872_v37 }
 0x34d   :  { %1131 = vmatmul.mubr.msk.f32.vlgmr.msra.gmra.mrb[2].mxu1 %vm550_vm7, %v873_v38 }
 0x420   :  { %v1132_v41 = vpop.f32.mrb[2].mxu1 }
 0x421   :  { %v960_v42 = vadd.f32 %v1132_v41, %v881_v40  ;;  %v954_v43 = vpop.f32.mrb[3].mxu1 }
 0x422   :  { %v955_v44 = vadd.f32 %v954_v43, %v881_v40 }
 0x423   :  { %965 = vst.msk [vmem:[%s1407_s6 + $0x8] sm:$0xff] %vm963_vm8, %v960_v42 }
 0x424   :  { %964 = vst.msk [vmem:[%s1407_s6] sm:$0xff] %vm963_vm8, %v955_v44 }

</bundles_post_ra>
